<compile_context>
chip_gen: v7x
topology: tpu7x:2x2x1
jax: 0.10.0
libtpu: 0.0.40
codegen_flags: <defaults>
</compile_context>

<pallas_src>
import jax
import jax.numpy as jnp
import numpy as np
from jax.experimental import pallas as pl
from jax.experimental.pallas import tpu as pltpu


def _audio_concat_kernel(x_ref, pe_ref, out_ref):
    """Assemble one output block and store it with a single full-block write.

    x_ref  : (TB, TN, P)       patched audio tile
    pe_ref : (TN, C_pos)       batch-invariant Fourier position encoding tile
    out_ref: (TB, TN, P+C_pos)
    """
    x = x_ref[...]
    pe = pe_ref[...].astype(out_ref.dtype)                 # (TN, C_pos)
    tb = x.shape[0]
    pe_b = jnp.broadcast_to(pe[None, :, :], (tb,) + pe.shape)
    out_ref[...] = jnp.concatenate([x, pe_b], axis=-1)


def _vmem_budgets():
    """Generation-aware block-footprint budget + scoped VMEM limit (bytes)."""
    try:
        physical = int(pltpu.get_tpu_info().vmem_capacity_bytes)
    except Exception:  # no device / query unavailable -> assume v7x (smallest)
        physical = 64 << 20
    budget = min(20 << 20, physical // 3)                 # block footprint target
    limit = min(physical - (8 << 20), max(32 << 20, 2 * budget))
    return budget, int(limit)


def _choose_tiles(B, N, P, C_pos, C_out, *, vmem_budget_bytes, min_n_tiles=2):
    """Pick (TB, TN).

    Tiny problems -> one block.  Otherwise: at least `min_n_tiles` n-tiles
    (so v7x's two TensorCores both get work), TN a multiple of 8 (or full N),
    sized so double-buffered blocks fit the budget.
    """

    def block_bytes(tb, tn):
        # f32, double-buffered x / pe / out blocks.
        return 4 * 2 * (tb * tn * P + tn * C_pos + tb * tn * C_out)

    total_bytes = 4 * B * N * (P + C_pos + C_out)

    # Tiny problems: single block; pipeline / megacore split not worth it.
    if total_bytes <= (256 << 10) and block_bytes(B, N) <= vmem_budget_bytes:
        return B, N

    tn = -(-N // min_n_tiles)                 # ceil(N / min_n_tiles)
    tn = min(N, -(-tn // 8) * 8)              # round up to multiple of 8 (or N)

    for tb in (B, 1):
        t = tn
        while t > 8 and block_bytes(tb, t) > vmem_budget_bytes:
            t = max(8, (t - 8) // 8 * 8)
        if block_bytes(tb, t) <= vmem_budget_bytes:
            return tb, t
    return 1, min(N, 8)


def audio_preprocessor(inputs, *, samples_per_patch, num_bands):
    """Pallas implementation of AudioPreprocessor.forward
    (prep_type='patches', concat_or_add_pos='concat', Fourier pos-enc,
    n_extra_pos_mlp=0, pos=None)."""
    B = inputs.shape[0]
    x = jnp.reshape(inputs, (B, -1, samples_per_patch)).astype(jnp.float32)
    _, N, P = x.shape
    K = num_bands
    C_pos = 1 + 2 * K
    C_out = P + C_pos

    # Batch-invariant Fourier position encoding, computed once in plain JAX:
    # linear positions in [-1, 1] over the single index dim, frequency bands
    # linspace(1, max_resolution/2, K) with max_resolution = N.
    pos = jnp.linspace(-1.0, 1.0, N, dtype=jnp.float32).reshape(N, 1)
    freqs = jnp.linspace(1.0, N / 2.0, K, dtype=jnp.float32).reshape(1, K)
    scaled = pos * freqs * jnp.float32(np.pi)
    pos_enc = jnp.concatenate([pos, jnp.sin(scaled), jnp.cos(scaled)], axis=-1)

    vmem_budget, vmem_limit = _vmem_budgets()
    TB, TN = _choose_tiles(B, N, P, C_pos, C_out, vmem_budget_bytes=vmem_budget)

    # n is the OUTER grid axis so the pos-enc block index is constant across
    # the inner batch loop (its DMA is issued once per n-tile).
    grid = (pl.cdiv(N, TN), pl.cdiv(B, TB))

    cost = pl.CostEstimate(
        flops=0,
        transcendentals=0,
        bytes_accessed=int(4 * (B * N * P + N * C_pos + B * N * C_out)),
    )

    out_with_pos = pl.pallas_call(
        _audio_concat_kernel,
        out_shape=jax.ShapeDtypeStruct((B, N, C_out), jnp.float32),
        grid=grid,
        in_specs=[
            pl.BlockSpec((TB, TN, P), lambda n, b: (b, n, 0)),
            pl.BlockSpec((TN, C_pos), lambda n, b: (n, 0)),
        ],
        out_specs=pl.BlockSpec((TB, TN, C_out), lambda n, b: (b, n, 0)),
        compiler_params=pltpu.CompilerParams(
            dimension_semantics=("parallel", "parallel"),
            vmem_limit_bytes=vmem_limit,
        ),
        cost_estimate=cost,
    )(x, pos_enc)

    # inputs_without_pos is bit-identical to the patched input; return the
    # metadata-only reshape instead of writing it again from the kernel.
    # TODO(synk): n_extra_pos_mlp > 0 and concat_or_add_pos='add' branches are
    # not implemented (module defaults are 0 / 'concat').
    # TODO(synk): a channels-first (B, C_out, N) lane-dense output (or a v7x
    # DMA-direct x->out copy) would remove the remaining masked stores, but
    # changes the layout the downstream Perceiver encoder consumes.
    return out_with_pos, x


def _reference(inputs, *, samples_per_patch, num_bands):
    """Pure-JAX reference for correctness checks."""
    B = inputs.shape[0]
    x = jnp.reshape(inputs, (B, -1, samples_per_patch)).astype(jnp.float32)
    N = x.shape[1]
    pos = jnp.linspace(-1.0, 1.0, N, dtype=jnp.float32).reshape(N, 1)
    freqs = jnp.linspace(1.0, N / 2.0, num_bands, dtype=jnp.float32).reshape(
        1, num_bands
    )
    scaled = pos * freqs * jnp.float32(np.pi)
    pos_enc = jnp.concatenate([pos, jnp.sin(scaled), jnp.cos(scaled)], axis=-1)
    pos_enc = jnp.broadcast_to(pos_enc[None], (B,) + pos_enc.shape)
    return jnp.concatenate([x, pos_enc], axis=-1), x


def _check(B, samples_per_patch, n_patches, num_bands, seed):
    key = jax.random.PRNGKey(seed)
    audio = jax.random.normal(
        key, (B, samples_per_patch * n_patches), dtype=jnp.float32
    )
    out, out_no_pos = audio_preprocessor(
        audio, samples_per_patch=samples_per_patch, num_bands=num_bands
    )
    jax.block_until_ready(out)
    jax.block_until_ready(out_no_pos)
    ref_out, ref_no_pos = _reference(
        audio, samples_per_patch=samples_per_patch, num_bands=num_bands
    )
    assert out.shape == (B, n_patches, samples_per_patch + 1 + 2 * num_bands)
    assert out_no_pos.shape == (B, n_patches, samples_per_patch)
    np.testing.assert_allclose(
        np.asarray(out), np.asarray(ref_out), rtol=1e-5, atol=1e-5
    )
    np.testing.assert_allclose(
        np.asarray(out_no_pos), np.asarray(ref_no_pos), rtol=1e-5, atol=1e-5
    )


if __name__ == "__main__":
    # Small case (single-block path): B=2, 16 samples/patch, 8 patches, 4 bands.
    _check(B=2, samples_per_patch=16, n_patches=8, num_bands=4, seed=0)
    # Medium case (tiled path with a partial edge n-tile): B=3, default
    # samples_per_patch=96, 200 patches -> N % TN != 0 exercised.
    _check(B=3, samples_per_patch=96, n_patches=200, num_bands=4, seed=0)
    print("KERNEL_OK")
</pallas_src>

<mosaic_0001>
module attributes {stable_mosaic.version = 11 : i64} {
  func.func @_audio_concat_kernel(%arg0: i32, %arg1: i32, %arg2: memref<2x8x16xf32, #tpu.memory_space<vmem>>, %arg3: memref<8x9xf32, #tpu.memory_space<vmem>>, %arg4: memref<2x8x25xf32, #tpu.memory_space<vmem>>) attributes {dimension_semantics = [#tpu.dimension_semantics<parallel>, #tpu.dimension_semantics<parallel>], iteration_bounds = array<i64: 1, 1>, scalar_prefetch = 0 : i64, scratch_operands = 0 : i64, tpu.core_type = #tpu.core_type<tc>, window_params = [{transform_indices = @transform_0, window_bounds = array<i64: 2, 8, 16>}, {transform_indices = @transform_1, window_bounds = array<i64: 8, 9>}, {transform_indices = @transform_2, window_bounds = array<i64: 2, 8, 25>}]} {
    %c0 = arith.constant 0 : index
    %c0_0 = arith.constant 0 : index
    %c0_1 = arith.constant 0 : index
    %0 = vector.load %arg2[%c0, %c0_0, %c0_1] : memref<2x8x16xf32, #tpu.memory_space<vmem>>, vector<2x8x16xf32>
    %c0_2 = arith.constant 0 : index
    %c0_3 = arith.constant 0 : index
    %1 = vector.load %arg3[%c0_2, %c0_3] : memref<8x9xf32, #tpu.memory_space<vmem>>, vector<8x9xf32>
    %2 = vector.shape_cast %1 : vector<8x9xf32> to vector<1x8x9xf32>
    %3 = vector.shape_cast %2 : vector<1x8x9xf32> to vector<1x8x9xf32>
    %4 = vector.broadcast %3 : vector<1x8x9xf32> to vector<2x8x9xf32>
    %5 = tpu.concatenate %0, %4 in 2 : vector<2x8x16xf32>, vector<2x8x9xf32> -> vector<2x8x25xf32>
    %c0_4 = arith.constant 0 : index
    %c0_5 = arith.constant 0 : index
    %c0_6 = arith.constant 0 : index
    %6 = vector.load %arg4[%c0_4, %c0_5, %c0_6] : memref<2x8x25xf32, #tpu.memory_space<vmem>>, vector<2x8x25xf32>
    tpu.vector_store %arg4[%c0_4, %c0_5, %c0_6], %5 {strides = array<i32>} : memref<2x8x25xf32, #tpu.memory_space<vmem>>, vector<2x8x25xf32>,
    return
  }
  func.func @transform_0(%arg0: i32, %arg1: i32) -> (i32, i32, i32) {
    %c0_i32 = arith.constant 0 : i32
    %c0_i32_0 = arith.constant 0 : i32
    return %arg1, %arg0, %c0_i32 : i32, i32, i32
  }
  func.func @transform_1(%arg0: i32, %arg1: i32) -> (i32, i32) {
    %c0_i32 = arith.constant 0 : i32
    %c0_i32_0 = arith.constant 0 : i32
    return %arg0, %c0_i32 : i32, i32
  }
  func.func @transform_2(%arg0: i32, %arg1: i32) -> (i32, i32, i32) {
    %c0_i32 = arith.constant 0 : i32
    %c0_i32_0 = arith.constant 0 : i32
    return %arg1, %arg0, %c0_i32 : i32, i32, i32
  }
}

</mosaic_0001>

<bundles_post_ra>
// kernel: tpu_custom_call.1
= control target key start
LH: loop header
LB: loop body
LE: loop exit
PB: predicated region body
PF: predicated region fallthrough
CT: control target
= control target key end

     0   :  { %7 = vsyncpa [#allocation3], 0  ;;  %s210_s0 = inlined_call_operand.hbm [shape: f32[2,8,16], index: 0, kind: input, shape index: {}]   ;;  %s211_s1 = inlined_call_operand.hbm [shape: f32[8,9], index: 1, kind: input, shape index: {}]   ;;  %s212_s2 = inlined_call_operand.hbm [shape: f32[2,8,25], index: 2, kind: output, shape index: {}]  }
   0x1   :  { %8 = vsyncpa [#allocation6], 0 }
   0x2   :  { %9 = vsyncpa [#allocation4], 0  ;;  %s147_s9 = smov [#allocation2]   ;;  %s75_s13 = scalar_lea.hbm %s210_s0, 256 }
   0x3   :  { %s15_s10 = sshll.u32 %s147_s9, 4  ;;  %p76_p0 = scmp.ne.s32.totalorder %s210_s0, %s75_s13  ;;  %s16_s10 = int_to_ptr.vmem [resolvable:$true] %s15_s10 }
   0x4   :  { %p79_p1 = scmp.lt.u32.totalorder %s75_s13, %s210_s0 }
   0x6   :  { %p81_p2 = pnand %p79_p1, %p76_p0 }
   0x8   :  { %84 = shalt.err (!%p81_p2)
}
   0x9   :  { %s85_s18 = scalar_lea.vmem %s16_s10, 256  ;;  %p90_p4 = scmp.lt.s32.totalorder %s16_s10, %s16_s10 }
   0xa   :  { %p86_p3 = scmp.ne.s32.totalorder %s16_s10, %s85_s18  ;;  %p91_p5 = scmp.lt.s32.totalorder %s85_s18, %s85_s18 }
   0xc   :  { %p92_p6 = por %p91_p5, %p90_p4 }
   0xe   :  { %p93_p7 = pnand %p92_p6, %p86_p3 }
  0x10   :  { %96 = shalt.err (!%p93_p7)
}
  0x11   :  { %s148_s19 = smov 128   ;;  %s149_s20 = smov 8  }
  0x12   :  { %21 = dma.hbm_to_vmem [thread:$0]  %s210_s0, 256, %s16_s10, [#allocation3], %s148_s19, %s148_s19, %s149_s20  }
  0x13   :  { %s150_s23 = smov [#allocation5]   ;;  %s97_s27 = scalar_lea.hbm %s211_s1, 128 }
  0x14   :  { %s28_s24 = sshll.u32 %s150_s23, 4  ;;  %p98_p8 = scmp.ne.s32.totalorder %s211_s1, %s97_s27  ;;  %s29_s24 = int_to_ptr.vmem [resolvable:$true] %s28_s24 }
  0x15   :  { %p101_p9 = scmp.lt.u32.totalorder %s97_s27, %s211_s1 }
  0x17   :  { %p103_p10 = pnand %p101_p9, %p98_p8 }
  0x19   :  { %106 = shalt.err (!%p103_p10)
}
  0x1a   :  { %s107_s4 = scalar_lea.vmem %s29_s24, 128  ;;  %p112_p12 = scmp.lt.s32.totalorder %s29_s24, %s29_s24 }
  0x1b   :  { %p108_p11 = scmp.ne.s32.totalorder %s29_s24, %s107_s4  ;;  %p113_p13 = scmp.lt.s32.totalorder %s107_s4, %s107_s4 }
  0x1d   :  { %p114_p0 = por %p113_p13, %p112_p12 }
  0x1f   :  { %p115_p1 = pnand %p114_p0, %p108_p11 }
  0x21   :  { %118 = shalt.err (!%p115_p1)
}
  0x22   :  { %31 = dma.hbm_to_vmem [thread:$0]  %s211_s1, 128, %s29_s24, [#allocation6]  }
  0x23   :  { %141 = dma.done.wait [#allocation3], 256  }
  0x24   :  { %142 = vsyncadd [#allocation3], 4294967040 }
  0x25   :  { %143 = dma.done.wait [#allocation6], 128  }
  0x26   :  { %144 = vsyncadd [#allocation6], 4294967168  ;;  %v40_v0 = vld [vmem:[#allocation5] sm:$0xff]  ;;  %s151_s6 = smov 16   ;;  %s152_s7 = smov [#allocation7]   ;;  %v38_v1 = vld [vmem:[#allocation2] sm:$0xff] }
  0x27   :  { %42 = vrot.lane.b32.xlu0 %v40_v0, %s151_s6  ;;  %s56_s8 = sshll.u32 %s152_s7, 4  ;;  %v39_v2 = vld [vmem:[#allocation2 + $0x8] sm:$0xff]  ;;  %vm45_vm0 = vcmask 130048   ;;  %vm48_vm1 = vcmask 203776   ;;  %s57_s8 = int_to_ptr.vmem [resolvable:$true] %s56_s8 }
  0x28   :  { %s119_s1 = scalar_lea.vmem %s57_s8, 256  ;;  %p124_p3 = scmp.lt.s32.totalorder %s57_s8, %s57_s8 }
  0x29   :  { %p120_p2 = scmp.ne.s32.totalorder %s57_s8, %s119_s1  ;;  %p125_p4 = scmp.lt.s32.totalorder %s119_s1, %s119_s1 }
  0x2b   :  { %p126_p5 = por %p125_p4, %p124_p3 }
  0x2d   :  { %p127_p6 = pnand %p126_p5, %p120_p2 }
  0x99   :  { %v43_v3 = vpop.permute.xlu0 %42 }
  0x9a   :  { %v46_v4 = vsel %vm45_vm0, %v38_v1, %v43_v3  ;;  %v47_v5 = vsel %vm45_vm0, %v39_v2, %v43_v3 }
  0x9b   :  { %49 = vst.msk [vmem:[#allocation7] sm:$0xff] %vm48_vm1, %v46_v4  ;;  %50 = vst.msk [vmem:[#allocation7 + $0x8] sm:$0xff] %vm48_vm1, %v47_v5 }
  0x9c   :  { %130 = shalt.err (!%p127_p6)
}
  0x9d   :  { %s131_s11 = scalar_lea.hbm %s212_s2, 256 }
  0x9e   :  { %p132_p7 = scmp.ne.s32.totalorder %s212_s2, %s131_s11  ;;  %p135_p8 = scmp.lt.u32.totalorder %s131_s11, %s212_s2 }
  0xa0   :  { %p137_p9 = pnand %p135_p8, %p132_p7 }
  0xa2   :  { %140 = shalt.err (!%p137_p9)
}
  0xa3   :  { %62 = dma.vmem_to_hbm [thread:$0]  %s57_s8, 256, %s212_s2, [#allocation4], %s148_s19, %s148_s19, %s149_s20  }
  0xa4   :  { %145 = dma.done.wait [#allocation4], 256  }
  0xa5   :  { %146 = vsyncadd [#allocation4], 4294967040 }
  0xa6   :  { %66 = vsyncpa [#allocation3], 1 }
  0xa7   :  { %67 = vsyncpa [#allocation6], 1 }
  0xa8   :  { %68 = vsyncpa [#allocation4], 1 }

</bundles_post_ra>
